<compile_context>
chip_gen: v6e
topology: v6e:2x2x1
jax: 0.10.0
libtpu: 0.0.40
codegen_flags: <defaults>
</compile_context>

<pallas_src>
import functools
import math

import jax
import jax.numpy as jnp
from jax.experimental import pallas as pl
from jax.experimental.pallas import tpu as pltpu

LN_EPS = 1e-5
NEG_BIG = -1e30   # finite "-inf": avoids (-inf)-(-inf)=NaN under full masking


def _layer_norm(v, g, b):
    mu = jnp.mean(v, axis=-1, keepdims=True)
    var = jnp.mean((v - mu) ** 2, axis=-1, keepdims=True)
    return (v - mu) * jax.lax.rsqrt(var + LN_EPS) * g + b


def clip_layer_kernel(x_ref, g1_ref, bt1_ref,
                      wqkv_ref, bqkv_ref, wo_ref, bo_ref,
                      g2_ref, bt2_ref,
                      w1_ref, bf1_ref, w2_ref, bf2_ref,
                      o_ref, attn_scr,
                      *, n_head, heads_per_group, approx_recip, fast_gelu):
    f32 = jnp.float32
    cdt = wqkv_ref.dtype                      # matmul operand dtype (bf16/f32)
    x = x_ref[0].astype(f32)                  # (S, D)
    S, D = x.shape
    dh = D // n_head
    hpg = heads_per_group
    gw = hpg * dh                             # lane width of one head group
    n_groups = n_head // hpg

    # ---------------- layernorm_1 + causal self-attention --------------------
    h = _layer_norm(x, g1_ref[...], bt1_ref[...]).astype(cdt)     # (S, D)

    # Causal mask built once, reused by every head.
    row = jax.lax.broadcasted_iota(jnp.int32, (S, S), 0)
    col = jax.lax.broadcasted_iota(jnp.int32, (S, S), 1)
    causal = col > row                         # strict upper triangle

    def group_body(g, carry):
        # Group QKV projection: (S,D)@(D,3*gw).  Weights/bias are indexed on
        # the leading (group) dim only -> cheap dynamic indexing, f32 accum.
        qkv_g = jnp.dot(h, wqkv_ref[g], preferred_element_type=f32) + bqkv_ref[g]
        outs = []
        for i in range(hpg):                   # short static loop inside body
            q = qkv_g[:, i * dh:(i + 1) * dh].astype(cdt)
            k = qkv_g[:, gw + i * dh:gw + (i + 1) * dh].astype(cdt)
            v = qkv_g[:, 2 * gw + i * dh:2 * gw + (i + 1) * dh].astype(cdt)
            s = jax.lax.dot_general(q, k, (((1,), (1,)), ((), ())),
                                    preferred_element_type=f32)   # (S, S)
            s = jnp.where(causal, NEG_BIG, s)
            s = s - jnp.max(s, axis=-1, keepdims=True)
            p = jnp.exp(s)
            den = jnp.sum(p, axis=-1, keepdims=True)
            if approx_recip:
                p = p * pl.reciprocal(den, approx=True)   # EUP slot, ~free
            else:
                p = p / den
            outs.append(jnp.dot(p.astype(cdt), v, preferred_element_type=f32))
        pv = outs[0] if hpg == 1 else jnp.concatenate(outs, axis=1)  # (S, gw)
        attn_scr[g] = pv.astype(cdt)          # full-width, lane-dense store
        return carry

    jax.lax.fori_loop(0, n_groups, group_body, 0)

    # Reassemble (S, D) in head-major order (groups are consecutive heads) and
    # run a single full-K output projection (S,D)@(D,D).
    if n_groups == 1:
        attn_in = attn_scr[0]
    else:
        attn_in = jnp.concatenate([attn_scr[i] for i in range(n_groups)], axis=1)
    attn = jnp.dot(attn_in, wo_ref[...], preferred_element_type=f32) + bo_ref[...]
    x = x + attn

    # ---------------- layernorm_2 + MLP (quick-GELU) + residual --------------
    h2 = _layer_norm(x, g2_ref[...], bt2_ref[...])
    t = jnp.dot(h2.astype(cdt), w1_ref[...],
                preferred_element_type=f32) + bf1_ref[...]          # (S, 4D)
    te = t.astype(cdt) if fast_gelu else t
    act = (te * jax.nn.sigmoid(1.702 * te)).astype(cdt)             # quick-GELU
    y = jnp.dot(act, w2_ref[...], preferred_element_type=f32) + bf2_ref[...]
    o_ref[0] = (x + y).astype(o_ref.dtype)


def _heads_per_group(n_head, d_head):
    """Group heads so one group spans >=128 lanes when possible (dh<128)."""
    if d_head < 128 and 128 % d_head == 0:
        return math.gcd(n_head, 128 // d_head)
    return 1


def clip_layer(x, params, n_head, compute_dtype=jnp.bfloat16):
    B, S, D = x.shape
    assert D % n_head == 0
    dh = D // n_head
    cdt = jnp.dtype(compute_dtype)
    f32 = jnp.float32
    scale = 1.0 / math.sqrt(dh)

    hpg = _heads_per_group(n_head, dh)
    gw = hpg * dh
    n_groups = n_head // hpg

    # ---- repack PyTorch-layout parameters (y = x @ W.T + b) -----------------
    w_in_t = params["w_in"].T                 # (D, 3D) columns = [q | k | v]
    b_in = params["b_in"]
    wq = w_in_t[:, :D] * scale                # fold 1/sqrt(d_head) into Q
    wk = w_in_t[:, D:2 * D]
    wv = w_in_t[:, 2 * D:]
    bq = b_in[:D] * scale
    bk = b_in[D:2 * D]
    bv = b_in[2 * D:]

    def group_w(w):                            # (D, D) -> (G, D, gw)
        return w.reshape(D, n_groups, gw).transpose(1, 0, 2)

    def group_b(b):                            # (D,) -> (G, 1, gw)
        return b.reshape(n_groups, 1, gw)

    wqkv = jnp.concatenate([group_w(wq), group_w(wk), group_w(wv)],
                           axis=-1).astype(cdt)                    # (G, D, 3gw)
    bqkv = jnp.concatenate([group_b(bq), group_b(bk), group_b(bv)],
                           axis=-1).astype(f32)                    # (G, 1, 3gw)
    wo = params["w_out"].T.astype(cdt)                             # (D, D)
    bo = params["b_out"].reshape(1, D).astype(f32)
    g1 = params["g1"].reshape(1, D).astype(f32)
    bt1 = params["bt1"].reshape(1, D).astype(f32)
    g2 = params["g2"].reshape(1, D).astype(f32)
    bt2 = params["bt2"].reshape(1, D).astype(f32)
    w1 = params["w1"].T.astype(cdt)                                # (D, 4D)
    bf1 = params["bf1"].reshape(1, 4 * D).astype(f32)
    w2 = params["w2"].T.astype(cdt)                                # (4D, D)
    bf2 = params["bf2"].reshape(1, D).astype(f32)

    args = (x, g1, bt1, wqkv, bqkv, wo, bo, g2, bt2, w1, bf1, w2, bf2)

    def const_spec(a):
        nd = a.ndim
        # Constant index map across the grid -> single-buffer (no point in
        # double-buffering weights that never change).
        return pl.BlockSpec(a.shape, lambda b, _nd=nd: (0,) * _nd,
                            pipeline_mode=pl.Buffered(1))

    in_specs = [pl.BlockSpec((1, S, D), lambda b: (b, 0, 0))]
    in_specs += [const_spec(a) for a in args[1:]]

    # ---- VMEM budget: single-buffered constants + double-buffered x/out
    #      slabs + scratch + f32 temporaries, clamped to device capacity. -----
    const_bytes = sum(int(a.size) * a.dtype.itemsize for a in args[1:])
    slab_bytes = S * D * x.dtype.itemsize
    scratch_bytes = n_groups * S * gw * cdt.itemsize
    act_bytes = 4 * S * (3 * gw + 3 * S + 8 * D + 2 * D)   # rough f32 temps
    need = const_bytes + 4 * slab_bytes + scratch_bytes + act_bytes + (8 << 20)
    try:
        cap = int(getattr(pltpu.get_tpu_info(), "vmem_capacity_bytes",
                          128 << 20))
    except Exception:
        cap = 64 << 20
    vmem_limit = int(max(16 << 20, min(cap - (8 << 20), max(32 << 20, need))))

    flops = 24 * B * S * D * D + 4 * B * n_head * S * S * dh
    transcendentals = B * (n_head * S * S + S * 4 * D)
    bytes_accessed = const_bytes + 2 * B * S * D * x.dtype.itemsize

    kernel = functools.partial(
        clip_layer_kernel, n_head=n_head, heads_per_group=hpg,
        approx_recip=(cdt != jnp.dtype(jnp.float32)),
        fast_gelu=(cdt == jnp.dtype(jnp.bfloat16)))   # pass f32 on v5e

    return pl.pallas_call(
        kernel,
        out_shape=jax.ShapeDtypeStruct((B, S, D), x.dtype),
        grid=(B,),
        in_specs=in_specs,
        out_specs=pl.BlockSpec((1, S, D), lambda b: (b, 0, 0)),
        scratch_shapes=[pltpu.VMEM((n_groups, S, gw), cdt)],
        compiler_params=pltpu.CompilerParams(
            dimension_semantics=("parallel",),
            vmem_limit_bytes=vmem_limit),
        cost_estimate=pl.CostEstimate(flops=int(flops),
                                      transcendentals=int(transcendentals),
                                      bytes_accessed=int(bytes_accessed)),
    )(*args)


def init_params(key, n_embd):
    D = n_embd
    ks = jax.random.split(key, 12)
    wsc = 0.2
    return {
        "g1": 1.0 + 0.1 * jax.random.normal(ks[0], (D,), jnp.float32),
        "bt1": 0.1 * jax.random.normal(ks[1], (D,), jnp.float32),
        "w_in": wsc * jax.random.normal(ks[2], (3 * D, D), jnp.float32),
        "b_in": 0.1 * jax.random.normal(ks[3], (3 * D,), jnp.float32),
        "w_out": wsc * jax.random.normal(ks[4], (D, D), jnp.float32),
        "b_out": 0.1 * jax.random.normal(ks[5], (D,), jnp.float32),
        "g2": 1.0 + 0.1 * jax.random.normal(ks[6], (D,), jnp.float32),
        "bt2": 0.1 * jax.random.normal(ks[7], (D,), jnp.float32),
        "w1": wsc * jax.random.normal(ks[8], (4 * D, D), jnp.float32),
        "bf1": 0.1 * jax.random.normal(ks[9], (4 * D,), jnp.float32),
        "w2": wsc * jax.random.normal(ks[10], (D, 4 * D), jnp.float32),
        "bf2": 0.1 * jax.random.normal(ks[11], (D,), jnp.float32),
    }


def reference(x, p, n_head):
    """Pure-JAX transcription of the PyTorch forward, for validation."""
    B, S, D = x.shape
    dh = D // n_head

    def ln(v, g, b):
        mu = v.mean(-1, keepdims=True)
        var = ((v - mu) ** 2).mean(-1, keepdims=True)
        return (v - mu) / jnp.sqrt(var + LN_EPS) * g + b

    res = x
    h = ln(x, p["g1"], p["bt1"])
    qkv = h @ p["w_in"].T + p["b_in"]
    q, k, v = jnp.split(qkv, 3, axis=-1)

    def split_heads(t):
        return t.reshape(B, S, n_head, dh).transpose(0, 2, 1, 3)

    q, k, v = split_heads(q), split_heads(k), split_heads(v)
    w = q @ k.transpose(0, 1, 3, 2)
    mask = jnp.triu(jnp.ones((S, S), dtype=bool), 1)
    w = jnp.where(mask, -jnp.inf, w) / jnp.sqrt(jnp.float32(dh))
    w = jax.nn.softmax(w, axis=-1)
    o = (w @ v).transpose(0, 2, 1, 3).reshape(B, S, D)
    o = o @ p["w_out"].T + p["b_out"]
    x = res + o

    res = x
    h = ln(x, p["g2"], p["bt2"])
    h = h @ p["w1"].T + p["bf1"]
    h = h * jax.nn.sigmoid(1.702 * h)
    h = h @ p["w2"].T + p["bf2"]
    return res + h


if __name__ == "__main__":
    B, S, D, H = 2, 8, 32, 4        # batch, seq, n_embd, n_head (d_head = 8)
    key = jax.random.PRNGKey(0)
    kx, kp = jax.random.split(key)
    x = jax.random.normal(kx, (B, S, D), jnp.float32)
    params = init_params(kp, D)

    ref = reference(x, params, H)
    run = jax.jit(clip_layer, static_argnames=("n_head", "compute_dtype"))

    # f32 matmul-operand path: algorithm check (tolerance allows for the MXU's
    # default f32 matmul precision on TPU).
    out_f32 = jax.block_until_ready(
        run(x, params, n_head=H, compute_dtype=jnp.float32))
    err_f32 = float(jnp.max(jnp.abs(out_f32 - ref)))
    tol_f32 = 2e-2 + 1e-2 * float(jnp.max(jnp.abs(ref)))
    assert err_f32 < tol_f32, f"f32 path max abs error {err_f32} (tol {tol_f32})"

    # Optimized path (bf16 MXU operands, f32 accumulation): looser tolerance.
    out_bf16 = jax.block_until_ready(
        run(x, params, n_head=H, compute_dtype=jnp.bfloat16))
    err_bf16 = float(jnp.max(jnp.abs(out_bf16 - ref)))
    tol_bf16 = 5e-2 + 2e-2 * float(jnp.max(jnp.abs(ref)))
    assert err_bf16 < tol_bf16, \
        f"bf16 path max abs error {err_bf16} (tol {tol_bf16})"

    print("KERNEL_OK")
</pallas_src>

<mosaic_0001>
module attributes {stable_mosaic.version = 11 : i64} {
  func.func @clip_layer_kernel(%arg0: i32, %arg1: memref<1x8x32xf32, #tpu.memory_space<vmem>>, %arg2: memref<1x32xf32, #tpu.memory_space<vmem>>, %arg3: memref<1x32xf32, #tpu.memory_space<vmem>>, %arg4: memref<1x32x96xf32, #tpu.memory_space<vmem>>, %arg5: memref<1x1x96xf32, #tpu.memory_space<vmem>>, %arg6: memref<32x32xf32, #tpu.memory_space<vmem>>, %arg7: memref<1x32xf32, #tpu.memory_space<vmem>>, %arg8: memref<1x32xf32, #tpu.memory_space<vmem>>, %arg9: memref<1x32xf32, #tpu.memory_space<vmem>>, %arg10: memref<32x128xf32, #tpu.memory_space<vmem>>, %arg11: memref<1x128xf32, #tpu.memory_space<vmem>>, %arg12: memref<128x32xf32, #tpu.memory_space<vmem>>, %arg13: memref<1x32xf32, #tpu.memory_space<vmem>>, %arg14: memref<1x8x32xf32, #tpu.memory_space<vmem>>, %arg15: memref<1x8x32xf32, #tpu.memory_space<vmem>>) attributes {dimension_semantics = [#tpu.dimension_semantics<parallel>], iteration_bounds = array<i64: 2>, scalar_prefetch = 0 : i64, scratch_operands = 1 : i64, tpu.core_type = #tpu.core_type<tc>, window_params = [{transform_indices = @transform_0, window_bounds = array<i64: 1, 8, 32>}, {pipeline_mode = #tpu.pipeline_mode<synchronous>, transform_indices = @transform_1, window_bounds = array<i64: 1, 32>}, {pipeline_mode = #tpu.pipeline_mode<synchronous>, transform_indices = @transform_2, window_bounds = array<i64: 1, 32>}, {pipeline_mode = #tpu.pipeline_mode<synchronous>, transform_indices = @transform_3, window_bounds = array<i64: 1, 32, 96>}, {pipeline_mode = #tpu.pipeline_mode<synchronous>, transform_indices = @transform_4, window_bounds = array<i64: 1, 1, 96>}, {pipeline_mode = #tpu.pipeline_mode<synchronous>, transform_indices = @transform_5, window_bounds = array<i64: 32, 32>}, {pipeline_mode = #tpu.pipeline_mode<synchronous>, transform_indices = @transform_6, window_bounds = array<i64: 1, 32>}, {pipeline_mode = #tpu.pipeline_mode<synchronous>, transform_indices = @transform_7, window_bounds = array<i64: 1, 32>}, {pipeline_mode = #tpu.pipeline_mode<synchronous>, transform_indices = @transform_8, window_bounds = array<i64: 1, 32>}, {pipeline_mode = #tpu.pipeline_mode<synchronous>, transform_indices = @transform_9, window_bounds = array<i64: 32, 128>}, {pipeline_mode = #tpu.pipeline_mode<synchronous>, transform_indices = @transform_10, window_bounds = array<i64: 1, 128>}, {pipeline_mode = #tpu.pipeline_mode<synchronous>, transform_indices = @transform_11, window_bounds = array<i64: 128, 32>}, {pipeline_mode = #tpu.pipeline_mode<synchronous>, transform_indices = @transform_12, window_bounds = array<i64: 1, 32>}, {transform_indices = @transform_13, window_bounds = array<i64: 1, 8, 32>}]} {
    %c0 = arith.constant 0 : index
    %c0_0 = arith.constant 0 : index
    %c0_1 = arith.constant 0 : index
    %0 = vector.load %arg1[%c0, %c0_0, %c0_1] : memref<1x8x32xf32, #tpu.memory_space<vmem>>, vector<1x8x32xf32>
    %1 = vector.shape_cast %0 : vector<1x8x32xf32> to vector<8x32xf32>
    %c0_2 = arith.constant 0 : index
    %c0_3 = arith.constant 0 : index
    %2 = vector.load %arg2[%c0_2, %c0_3] : memref<1x32xf32, #tpu.memory_space<vmem>>, vector<1x32xf32>
    %c0_4 = arith.constant 0 : index
    %c0_5 = arith.constant 0 : index
    %3 = vector.load %arg3[%c0_4, %c0_5] : memref<1x32xf32, #tpu.memory_space<vmem>>, vector<1x32xf32>
    %cst = arith.constant dense<0.000000e+00> : vector<8xf32>
    %4 = vector.multi_reduction <add>, %1, %cst [1] : vector<8x32xf32> to vector<8xf32>
    %5 = vector.shape_cast %4 : vector<8xf32> to vector<8x1xf32>
    %cst_6 = arith.constant 3.200000e+01 : f32
    %6 = vector.broadcast %cst_6 : f32 to vector<8x1xf32>
    %7 = arith.divf %5, %6 : vector<8x1xf32>
    %8 = vector.broadcast %7 : vector<8x1xf32> to vector<8x32xf32>
    %9 = arith.subf %1, %8 : vector<8x32xf32>
    %10 = arith.mulf %9, %9 : vector<8x32xf32>
    %cst_7 = arith.constant dense<0.000000e+00> : vector<8xf32>
    %11 = vector.multi_reduction <add>, %10, %cst_7 [1] : vector<8x32xf32> to vector<8xf32>
    %12 = vector.shape_cast %11 : vector<8xf32> to vector<8x1xf32>
    %cst_8 = arith.constant 3.200000e+01 : f32
    %13 = vector.broadcast %cst_8 : f32 to vector<8x1xf32>
    %14 = arith.divf %12, %13 : vector<8x1xf32>
    %15 = vector.broadcast %7 : vector<8x1xf32> to vector<8x32xf32>
    %16 = arith.subf %1, %15 : vector<8x32xf32>
    %cst_9 = arith.constant 9.99999974E-6 : f32
    %17 = vector.broadcast %cst_9 : f32 to vector<8x1xf32>
    %18 = arith.addf %14, %17 : vector<8x1xf32>
    %19 = math.rsqrt %18 : vector<8x1xf32>
    %20 = vector.broadcast %19 : vector<8x1xf32> to vector<8x32xf32>
    %21 = arith.mulf %16, %20 : vector<8x32xf32>
    %22 = vector.broadcast %2 : vector<1x32xf32> to vector<8x32xf32>
    %23 = arith.mulf %21, %22 : vector<8x32xf32>
    %24 = vector.broadcast %3 : vector<1x32xf32> to vector<8x32xf32>
    %25 = arith.addf %23, %24 : vector<8x32xf32>
    %26 = tpu.iota {dimensions = array<i32: 0>} : vector<8x8xi32>
    %27 = tpu.iota {dimensions = array<i32: 1>} : vector<8x8xi32>
    %28 = arith.cmpi sgt, %27, %26 : vector<8x8xi32>
    %c0_i32 = arith.constant 0 : i32
    %29 = arith.index_cast %c0_i32 : i32 to index
    %c0_10 = arith.constant 0 : index
    %c0_11 = arith.constant 0 : index
    %30 = vector.load %arg4[%29, %c0_10, %c0_11] : memref<1x32x96xf32, #tpu.memory_space<vmem>>, vector<1x32x96xf32>
    %31 = vector.shape_cast %30 : vector<1x32x96xf32> to vector<32x96xf32>
    %cst_12 = arith.constant dense<0.000000e+00> : vector<8x96xf32>
    %32 = tpu.matmul %25, %31, %cst_12 {dimension_numbers = #tpu.dot_dimension_numbers<[1], [0], [0], [1], [0, 0, 1, 1], [], []>} : vector<8x32xf32>, vector<32x96xf32>, vector<8x96xf32> -> vector<8x96xf32>
    %33 = arith.index_cast %c0_i32 : i32 to index
    %c0_13 = arith.constant 0 : index
    %c0_14 = arith.constant 0 : index
    %34 = vector.load %arg5[%33, %c0_13, %c0_14] : memref<1x1x96xf32, #tpu.memory_space<vmem>>, vector<1x1x96xf32>
    %35 = vector.shape_cast %34 : vector<1x1x96xf32> to vector<1x96xf32>
    %36 = vector.broadcast %35 : vector<1x96xf32> to vector<8x96xf32>
    %37 = arith.addf %32, %36 : vector<8x96xf32>
    %38 = vector.extract_strided_slice %37 {offsets = [0, 0], sizes = [8, 8], strides = [1, 1]} : vector<8x96xf32> to vector<8x8xf32>
    %39 = vector.extract_strided_slice %37 {offsets = [0, 32], sizes = [8, 8], strides = [1, 1]} : vector<8x96xf32> to vector<8x8xf32>
    %40 = vector.extract_strided_slice %37 {offsets = [0, 64], sizes = [8, 8], strides = [1, 1]} : vector<8x96xf32> to vector<8x8xf32>
    %cst_15 = arith.constant dense<0.000000e+00> : vector<8x8xf32>
    %41 = tpu.matmul %38, %39, %cst_15 {dimension_numbers = #tpu.dot_dimension_numbers<[1], [1], [0], [0], [0, 0, 1, 0], [], []>} : vector<8x8xf32>, vector<8x8xf32>, vector<8x8xf32> -> vector<8x8xf32>
    %cst_16 = arith.constant -1.000000e+30 : f32
    %42 = vector.broadcast %cst_16 : f32 to vector<8x8xf32>
    %43 = arith.select %28, %42, %41 : vector<8x8xi1>, vector<8x8xf32>
    %cst_17 = arith.constant dense<0xFF800000> : vector<8xf32>
    %44 = vector.multi_reduction <maximumf>, %43, %cst_17 [1] : vector<8x8xf32> to vector<8xf32>
    %45 = vector.shape_cast %44 : vector<8xf32> to vector<8x1xf32>
    %46 = vector.broadcast %45 : vector<8x1xf32> to vector<8x8xf32>
    %47 = arith.subf %43, %46 : vector<8x8xf32>
    %48 = math.exp %47 : vector<8x8xf32>
    %cst_18 = arith.constant dense<0.000000e+00> : vector<8xf32>
    %49 = vector.multi_reduction <add>, %48, %cst_18 [1] : vector<8x8xf32> to vector<8xf32>
    %50 = vector.shape_cast %49 : vector<8xf32> to vector<8x1xf32>
    %51 = vector.broadcast %50 : vector<8x1xf32> to vector<8x8xf32>
    %52 = arith.divf %48, %51 : vector<8x8xf32>
    %cst_19 = arith.constant dense<0.000000e+00> : vector<8x8xf32>
    %53 = tpu.matmul %52, %40, %cst_19 {dimension_numbers = #tpu.dot_dimension_numbers<[1], [0], [0], [1], [0, 0, 1, 1], [], []>} : vector<8x8xf32>, vector<8x8xf32>, vector<8x8xf32> -> vector<8x8xf32>
    %54 = vector.extract_strided_slice %37 {offsets = [0, 8], sizes = [8, 8], strides = [1, 1]} : vector<8x96xf32> to vector<8x8xf32>
    %55 = vector.extract_strided_slice %37 {offsets = [0, 40], sizes = [8, 8], strides = [1, 1]} : vector<8x96xf32> to vector<8x8xf32>
    %56 = vector.extract_strided_slice %37 {offsets = [0, 72], sizes = [8, 8], strides = [1, 1]} : vector<8x96xf32> to vector<8x8xf32>
    %cst_20 = arith.constant dense<0.000000e+00> : vector<8x8xf32>
    %57 = tpu.matmul %54, %55, %cst_20 {dimension_numbers = #tpu.dot_dimension_numbers<[1], [1], [0], [0], [0, 0, 1, 0], [], []>} : vector<8x8xf32>, vector<8x8xf32>, vector<8x8xf32> -> vector<8x8xf32>
    %cst_21 = arith.constant -1.000000e+30 : f32
    %58 = vector.broadcast %cst_21 : f32 to vector<8x8xf32>
    %59 = arith.select %28, %58, %57 : vector<8x8xi1>, vector<8x8xf32>
    %cst_22 = arith.constant dense<0xFF800000> : vector<8xf32>
    %60 = vector.multi_reduction <maximumf>, %59, %cst_22 [1] : vector<8x8xf32> to vector<8xf32>
    %61 = vector.shape_cast %60 : vector<8xf32> to vector<8x1xf32>
    %62 = vector.broadcast %61 : vector<8x1xf32> to vector<8x8xf32>
    %63 = arith.subf %59, %62 : vector<8x8xf32>
    %64 = math.exp %63 : vector<8x8xf32>
    %cst_23 = arith.constant dense<0.000000e+00> : vector<8xf32>
    %65 = vector.multi_reduction <add>, %64, %cst_23 [1] : vector<8x8xf32> to vector<8xf32>
    %66 = vector.shape_cast %65 : vector<8xf32> to vector<8x1xf32>
    %67 = vector.broadcast %66 : vector<8x1xf32> to vector<8x8xf32>
    %68 = arith.divf %64, %67 : vector<8x8xf32>
    %cst_24 = arith.constant dense<0.000000e+00> : vector<8x8xf32>
    %69 = tpu.matmul %68, %56, %cst_24 {dimension_numbers = #tpu.dot_dimension_numbers<[1], [0], [0], [1], [0, 0, 1, 1], [], []>} : vector<8x8xf32>, vector<8x8xf32>, vector<8x8xf32> -> vector<8x8xf32>
    %70 = vector.extract_strided_slice %37 {offsets = [0, 16], sizes = [8, 8], strides = [1, 1]} : vector<8x96xf32> to vector<8x8xf32>
    %71 = vector.extract_strided_slice %37 {offsets = [0, 48], sizes = [8, 8], strides = [1, 1]} : vector<8x96xf32> to vector<8x8xf32>
    %72 = vector.extract_strided_slice %37 {offsets = [0, 80], sizes = [8, 8], strides = [1, 1]} : vector<8x96xf32> to vector<8x8xf32>
    %cst_25 = arith.constant dense<0.000000e+00> : vector<8x8xf32>
    %73 = tpu.matmul %70, %71, %cst_25 {dimension_numbers = #tpu.dot_dimension_numbers<[1], [1], [0], [0], [0, 0, 1, 0], [], []>} : vector<8x8xf32>, vector<8x8xf32>, vector<8x8xf32> -> vector<8x8xf32>
    %cst_26 = arith.constant -1.000000e+30 : f32
    %74 = vector.broadcast %cst_26 : f32 to vector<8x8xf32>
    %75 = arith.select %28, %74, %73 : vector<8x8xi1>, vector<8x8xf32>
    %cst_27 = arith.constant dense<0xFF800000> : vector<8xf32>
    %76 = vector.multi_reduction <maximumf>, %75, %cst_27 [1] : vector<8x8xf32> to vector<8xf32>
    %77 = vector.shape_cast %76 : vector<8xf32> to vector<8x1xf32>
    %78 = vector.broadcast %77 : vector<8x1xf32> to vector<8x8xf32>
    %79 = arith.subf %75, %78 : vector<8x8xf32>
    %80 = math.exp %79 : vector<8x8xf32>
    %cst_28 = arith.constant dense<0.000000e+00> : vector<8xf32>
    %81 = vector.multi_reduction <add>, %80, %cst_28 [1] : vector<8x8xf32> to vector<8xf32>
    %82 = vector.shape_cast %81 : vector<8xf32> to vector<8x1xf32>
    %83 = vector.broadcast %82 : vector<8x1xf32> to vector<8x8xf32>
    %84 = arith.divf %80, %83 : vector<8x8xf32>
    %cst_29 = arith.constant dense<0.000000e+00> : vector<8x8xf32>
    %85 = tpu.matmul %84, %72, %cst_29 {dimension_numbers = #tpu.dot_dimension_numbers<[1], [0], [0], [1], [0, 0, 1, 1], [], []>} : vector<8x8xf32>, vector<8x8xf32>, vector<8x8xf32> -> vector<8x8xf32>
    %86 = vector.extract_strided_slice %37 {offsets = [0, 24], sizes = [8, 8], strides = [1, 1]} : vector<8x96xf32> to vector<8x8xf32>
    %87 = vector.extract_strided_slice %37 {offsets = [0, 56], sizes = [8, 8], strides = [1, 1]} : vector<8x96xf32> to vector<8x8xf32>
    %88 = vector.extract_strided_slice %37 {offsets = [0, 88], sizes = [8, 8], strides = [1, 1]} : vector<8x96xf32> to vector<8x8xf32>
    %cst_30 = arith.constant dense<0.000000e+00> : vector<8x8xf32>
    %89 = tpu.matmul %86, %87, %cst_30 {dimension_numbers = #tpu.dot_dimension_numbers<[1], [1], [0], [0], [0, 0, 1, 0], [], []>} : vector<8x8xf32>, vector<8x8xf32>, vector<8x8xf32> -> vector<8x8xf32>
    %cst_31 = arith.constant -1.000000e+30 : f32
    %90 = vector.broadcast %cst_31 : f32 to vector<8x8xf32>
    %91 = arith.select %28, %90, %89 : vector<8x8xi1>, vector<8x8xf32>
    %cst_32 = arith.constant dense<0xFF800000> : vector<8xf32>
    %92 = vector.multi_reduction <maximumf>, %91, %cst_32 [1] : vector<8x8xf32> to vector<8xf32>
    %93 = vector.shape_cast %92 : vector<8xf32> to vector<8x1xf32>
    %94 = vector.broadcast %93 : vector<8x1xf32> to vector<8x8xf32>
    %95 = arith.subf %91, %94 : vector<8x8xf32>
    %96 = math.exp %95 : vector<8x8xf32>
    %cst_33 = arith.constant dense<0.000000e+00> : vector<8xf32>
    %97 = vector.multi_reduction <add>, %96, %cst_33 [1] : vector<8x8xf32> to vector<8xf32>
    %98 = vector.shape_cast %97 : vector<8xf32> to vector<8x1xf32>
    %99 = vector.broadcast %98 : vector<8x1xf32> to vector<8x8xf32>
    %100 = arith.divf %96, %99 : vector<8x8xf32>
    %cst_34 = arith.constant dense<0.000000e+00> : vector<8x8xf32>
    %101 = tpu.matmul %100, %88, %cst_34 {dimension_numbers = #tpu.dot_dimension_numbers<[1], [0], [0], [1], [0, 0, 1, 1], [], []>} : vector<8x8xf32>, vector<8x8xf32>, vector<8x8xf32> -> vector<8x8xf32>
    %102 = tpu.concatenate %53, %69, %85, %101 in 1 : vector<8x8xf32>, vector<8x8xf32>, vector<8x8xf32>, vector<8x8xf32> -> vector<8x32xf32>
    %103 = arith.index_cast %c0_i32 : i32 to index
    %c0_35 = arith.constant 0 : index
    %c0_36 = arith.constant 0 : index
    %104 = vector.load %arg15[%103, %c0_35, %c0_36] : memref<1x8x32xf32, #tpu.memory_space<vmem>>, vector<1x8x32xf32>
    %105 = vector.shape_cast %104 : vector<1x8x32xf32> to vector<8x32xf32>
    %106 = vector.shape_cast %102 : vector<8x32xf32> to vector<1x8x32xf32>
    tpu.vector_store %arg15[%103, %c0_35, %c0_36], %106 {strides = array<i32>} : memref<1x8x32xf32, #tpu.memory_space<vmem>>, vector<1x8x32xf32>,
    %c1_i32 = arith.constant 1 : i32
    %c0_37 = arith.constant 0 : index
    %c0_38 = arith.constant 0 : index
    %c0_39 = arith.constant 0 : index
    %107 = vector.load %arg15[%c0_37, %c0_38, %c0_39] : memref<1x8x32xf32, #tpu.memory_space<vmem>>, vector<1x8x32xf32>
    %108 = vector.shape_cast %107 : vector<1x8x32xf32> to vector<8x32xf32>
    %c0_40 = arith.constant 0 : index
    %c0_41 = arith.constant 0 : index
    %109 = vector.load %arg6[%c0_40, %c0_41] : memref<32x32xf32, #tpu.memory_space<vmem>>, vector<32x32xf32>
    %cst_42 = arith.constant dense<0.000000e+00> : vector<8x32xf32>
    %110 = tpu.matmul %108, %109, %cst_42 {dimension_numbers = #tpu.dot_dimension_numbers<[1], [0], [0], [1], [0, 0, 1, 1], [], []>} : vector<8x32xf32>, vector<32x32xf32>, vector<8x32xf32> -> vector<8x32xf32>
    %c0_43 = arith.constant 0 : index
    %c0_44 = arith.constant 0 : index
    %111 = vector.load %arg7[%c0_43, %c0_44] : memref<1x32xf32, #tpu.memory_space<vmem>>, vector<1x32xf32>
    %112 = vector.broadcast %111 : vector<1x32xf32> to vector<8x32xf32>
    %113 = arith.addf %110, %112 : vector<8x32xf32>
    %114 = arith.addf %1, %113 : vector<8x32xf32>
    %c0_45 = arith.constant 0 : index
    %c0_46 = arith.constant 0 : index
    %115 = vector.load %arg8[%c0_45, %c0_46] : memref<1x32xf32, #tpu.memory_space<vmem>>, vector<1x32xf32>
    %c0_47 = arith.constant 0 : index
    %c0_48 = arith.constant 0 : index
    %116 = vector.load %arg9[%c0_47, %c0_48] : memref<1x32xf32, #tpu.memory_space<vmem>>, vector<1x32xf32>
    %cst_49 = arith.constant dense<0.000000e+00> : vector<8xf32>
    %117 = vector.multi_reduction <add>, %114, %cst_49 [1] : vector<8x32xf32> to vector<8xf32>
    %118 = vector.shape_cast %117 : vector<8xf32> to vector<8x1xf32>
    %cst_50 = arith.constant 3.200000e+01 : f32
    %119 = vector.broadcast %cst_50 : f32 to vector<8x1xf32>
    %120 = arith.divf %118, %119 : vector<8x1xf32>
    %121 = vector.broadcast %120 : vector<8x1xf32> to vector<8x32xf32>
    %122 = arith.subf %114, %121 : vector<8x32xf32>
    %123 = arith.mulf %122, %122 : vector<8x32xf32>
    %cst_51 = arith.constant dense<0.000000e+00> : vector<8xf32>
    %124 = vector.multi_reduction <add>, %123, %cst_51 [1] : vector<8x32xf32> to vector<8xf32>
    %125 = vector.shape_cast %124 : vector<8xf32> to vector<8x1xf32>
    %cst_52 = arith.constant 3.200000e+01 : f32
    %126 = vector.broadcast %cst_52 : f32 to vector<8x1xf32>
    %127 = arith.divf %125, %126 : vector<8x1xf32>
    %128 = vector.broadcast %120 : vector<8x1xf32> to vector<8x32xf32>
    %129 = arith.subf %114, %128 : vector<8x32xf32>
    %cst_53 = arith.constant 9.99999974E-6 : f32
    %130 = vector.broadcast %cst_53 : f32 to vector<8x1xf32>
    %131 = arith.addf %127, %130 : vector<8x1xf32>
    %132 = math.rsqrt %131 : vector<8x1xf32>
    %133 = vector.broadcast %132 : vector<8x1xf32> to vector<8x32xf32>
    %134 = arith.mulf %129, %133 : vector<8x32xf32>
    %135 = vector.broadcast %115 : vector<1x32xf32> to vector<8x32xf32>
    %136 = arith.mulf %134, %135 : vector<8x32xf32>
    %137 = vector.broadcast %116 : vector<1x32xf32> to vector<8x32xf32>
    %138 = arith.addf %136, %137 : vector<8x32xf32>
    %c0_54 = arith.constant 0 : index
    %c0_55 = arith.constant 0 : index
    %139 = vector.load %arg10[%c0_54, %c0_55] : memref<32x128xf32, #tpu.memory_space<vmem>>, vector<32x128xf32>
    %cst_56 = arith.constant dense<0.000000e+00> : vector<8x128xf32>
    %140 = tpu.matmul %138, %139, %cst_56 {dimension_numbers = #tpu.dot_dimension_numbers<[1], [0], [0], [1], [0, 0, 1, 1], [], []>} : vector<8x32xf32>, vector<32x128xf32>, vector<8x128xf32> -> vector<8x128xf32>
    %c0_57 = arith.constant 0 : index
    %c0_58 = arith.constant 0 : index
    %141 = vector.load %arg11[%c0_57, %c0_58] : memref<1x128xf32, #tpu.memory_space<vmem>>, vector<1x128xf32>
    %142 = vector.broadcast %141 : vector<1x128xf32> to vector<8x128xf32>
    %143 = arith.addf %140, %142 : vector<8x128xf32>
    %cst_59 = arith.constant 1.702000e+00 : f32
    %144 = vector.broadcast %cst_59 : f32 to vector<8x128xf32>
    %145 = arith.mulf %144, %143 : vector<8x128xf32>
    %146 = arith.negf %145 : vector<8x128xf32>
    %147 = math.exp %146 : vector<8x128xf32>
    %cst_60 = arith.constant 1.000000e+00 : f32
    %148 = vector.broadcast %cst_60 : f32 to vector<8x128xf32>
    %149 = arith.addf %148, %147 : vector<8x128xf32>
    %150 = arith.divf %148, %149 : vector<8x128xf32>
    %151 = arith.mulf %143, %150 : vector<8x128xf32>
    %c0_61 = arith.constant 0 : index
    %c0_62 = arith.constant 0 : index
    %152 = vector.load %arg12[%c0_61, %c0_62] : memref<128x32xf32, #tpu.memory_space<vmem>>, vector<128x32xf32>
    %cst_63 = arith.constant dense<0.000000e+00> : vector<8x32xf32>
    %153 = tpu.matmul %151, %152, %cst_63 {dimension_numbers = #tpu.dot_dimension_numbers<[1], [0], [0], [1], [0, 0, 1, 1], [], []>} : vector<8x128xf32>, vector<128x32xf32>, vector<8x32xf32> -> vector<8x32xf32>
    %c0_64 = arith.constant 0 : index
    %c0_65 = arith.constant 0 : index
    %154 = vector.load %arg13[%c0_64, %c0_65] : memref<1x32xf32, #tpu.memory_space<vmem>>, vector<1x32xf32>
    %155 = vector.broadcast %154 : vector<1x32xf32> to vector<8x32xf32>
    %156 = arith.addf %153, %155 : vector<8x32xf32>
    %157 = arith.addf %114, %156 : vector<8x32xf32>
    %c0_66 = arith.constant 0 : index
    %c0_67 = arith.constant 0 : index
    %c0_68 = arith.constant 0 : index
    %158 = vector.load %arg14[%c0_66, %c0_67, %c0_68] : memref<1x8x32xf32, #tpu.memory_space<vmem>>, vector<1x8x32xf32>
    %159 = vector.shape_cast %158 : vector<1x8x32xf32> to vector<8x32xf32>
    %160 = vector.shape_cast %157 : vector<8x32xf32> to vector<1x8x32xf32>
    tpu.vector_store %arg14[%c0_66, %c0_67, %c0_68], %160 {strides = array<i32>} : memref<1x8x32xf32, #tpu.memory_space<vmem>>, vector<1x8x32xf32>,
    return
  }
  func.func @transform_0(%arg0: i32) -> (i32, i32, i32) {
    %c0_i32 = arith.constant 0 : i32
    %c0_i32_0 = arith.constant 0 : i32
    %c0_i32_1 = arith.constant 0 : i32
    return %arg0, %c0_i32, %c0_i32_0 : i32, i32, i32
  }
  func.func @transform_1(%arg0: i32) -> (i32, i32) {
    %c0_i32 = arith.constant 0 : i32
    %c0_i32_0 = arith.constant 0 : i32
    %c0_i32_1 = arith.constant 0 : i32
    return %c0_i32, %c0_i32_0 : i32, i32
  }
  func.func @transform_2(%arg0: i32) -> (i32, i32) {
    %c0_i32 = arith.constant 0 : i32
    %c0_i32_0 = arith.constant 0 : i32
    %c0_i32_1 = arith.constant 0 : i32
    return %c0_i32, %c0_i32_0 : i32, i32
  }
  func.func @transform_3(%arg0: i32) -> (i32, i32, i32) {
    %c0_i32 = arith.constant 0 : i32
    %c0_i32_0 = arith.constant 0 : i32
    %c0_i32_1 = arith.constant 0 : i32
    %c0_i32_2 = arith.constant 0 : i32
    return %c0_i32, %c0_i32_0, %c0_i32_1 : i32, i32, i32
  }
  func.func @transform_4(%arg0: i32) -> (i32, i32, i32) {
    %c0_i32 = arith.constant 0 : i32
    %c0_i32_0 = arith.constant 0 : i32
    %c0_i32_1 = arith.constant 0 : i32
    %c0_i32_2 = arith.constant 0 : i32
    return %c0_i32, %c0_i32_0, %c0_i32_1 : i32, i32, i32
  }
  func.func @transform_5(%arg0: i32) -> (i32, i32) {
    %c0_i32 = arith.constant 0 : i32
    %c0_i32_0 = arith.constant 0 : i32
    %c0_i32_1 = arith.constant 0 : i32
    return %c0_i32, %c0_i32_0 : i32, i32
  }
  func.func @transform_6(%arg0: i32) -> (i32, i32) {
    %c0_i32 = arith.constant 0 : i32
    %c0_i32_0 = arith.constant 0 : i32
    %c0_i32_1 = arith.constant 0 : i32
    return %c0_i32, %c0_i32_0 : i32, i32
  }
  func.func @transform_7(%arg0: i32) -> (i32, i32) {
    %c0_i32 = arith.constant 0 : i32
    %c0_i32_0 = arith.constant 0 : i32
    %c0_i32_1 = arith.constant 0 : i32
    return %c0_i32, %c0_i32_0 : i32, i32
  }
  func.func @transform_8(%arg0: i32) -> (i32, i32) {
    %c0_i32 = arith.constant 0 : i32
    %c0_i32_0 = arith.constant 0 : i32
    %c0_i32_1 = arith.constant 0 : i32
    return %c0_i32, %c0_i32_0 : i32, i32
  }
  func.func @transform_9(%arg0: i32) -> (i32, i32) {
    %c0_i32 = arith.constant 0 : i32
    %c0_i32_0 = arith.constant 0 : i32
    %c0_i32_1 = arith.constant 0 : i32
    return %c0_i32, %c0_i32_0 : i32, i32
  }
  func.func @transform_10(%arg0: i32) -> (i32, i32) {
    %c0_i32 = arith.constant 0 : i32
    %c0_i32_0 = arith.constant 0 : i32
    %c0_i32_1 = arith.constant 0 : i32
    return %c0_i32, %c0_i32_0 : i32, i32
  }
  func.func @transform_11(%arg0: i32) -> (i32, i32) {
    %c0_i32 = arith.constant 0 : i32
    %c0_i32_0 = arith.constant 0 : i32
    %c0_i32_1 = arith.constant 0 : i32
    return %c0_i32, %c0_i32_0 : i32, i32
  }
  func.func @transform_12(%arg0: i32) -> (i32, i32) {
    %c0_i32 = arith.constant 0 : i32
    %c0_i32_0 = arith.constant 0 : i32
    %c0_i32_1 = arith.constant 0 : i32
    return %c0_i32, %c0_i32_0 : i32, i32
  }
  func.func @transform_13(%arg0: i32) -> (i32, i32, i32) {
    %c0_i32 = arith.constant 0 : i32
    %c0_i32_0 = arith.constant 0 : i32
    %c0_i32_1 = arith.constant 0 : i32
    return %arg0, %c0_i32, %c0_i32_0 : i32, i32, i32
  }
}

</mosaic_0001>

<bundles_post_ra>
// kernel: clip_layer.1
= control target key start
LH: loop header
LB: loop body
LE: loop exit
PB: predicated region body
PF: predicated region fallthrough
CT: control target
= control target key end

     0   :  { %s2345_s0 = inlined_call_operand.vmem [shape: f32[2,8,32], index: 0, kind: input, shape index: {}]   ;;  %s2346_s1 = inlined_call_operand.vmem [shape: f32[1,32], index: 1, kind: input, shape index: {}]   ;;  %s2347_s2 = inlined_call_operand.vmem [shape: f32[1,32], index: 2, kind: input, shape index: {}]   ;;  %s2348_s3 = inlined_call_operand.vmem [shape: f32[1,32,96], index: 3, kind: input, shape index: {}]   ;;  %s2349_s4 = inlined_call_operand.vmem [shape: f32[1,1,96], index: 4, kind: input, shape index: {}]   ;;  %s2350_s5 = inlined_call_operand.vmem [shape: f32[32,32], index: 5, kind: input, shape index: {}]   ;;  %s2351_s6 = inlined_call_operand.vmem [shape: f32[1,32], index: 6, kind: input, shape index: {}]   ;;  %s2352_s7 = inlined_call_operand.vmem [shape: f32[1,32], index: 7, kind: input, shape index: {}]   ;;  %s2353_s8 = inlined_call_operand.vmem [shape: f32[1,32], index: 8, kind: input, shape index: {}]   ;;  %s2354_s9 = inlined_call_operand.vmem [shape: f32[32,128], index: 9, kind: input, shape index: {}]   ;;  %s2355_s10 = inlined_call_operand.vmem [shape: f32[1,128], index: 10, kind: input, shape index: {}]   ;;  %s2356_s11 = inlined_call_operand.vmem [shape: f32[128,32], index: 11, kind: input, shape index: {}]   ;;  %s2357_s12 = inlined_call_operand.vmem [shape: f32[1,32], index: 12, kind: input, shape index: {}]   ;;  %s2358_s13 = inlined_call_operand.hbm [shape: f32[2,8,32], index: 13, kind: output, shape index: {}]  }
   0x1   :  { %2359 = sst [smem:[#allocation6_spill]] %s2345_s0 }
   0x2   :  { %2360 = sst [smem:[#allocation7_spill]] %s2346_s1 }
   0x3   :  { %2361 = sst [smem:[#allocation8_spill]] %s2347_s2 }
   0x4   :  { %2362 = sst [smem:[#allocation9_spill]] %s2348_s3 }
   0x5   :  { %18 = vsyncpa [#allocation4], 0 }
   0x6   :  { %20 = vsyncpa [#allocation4 + $0x1], 0  ;;  %s2032_s25 = smov 0   ;;  %s2034_s26 = smov 0  }
   0x7   :  { %s2036_s27 = smov 0   ;;  %s2038_s28 = smov 0  }
   0x8 LB: > { %s2053_s29 = sadd.s32 4294967295, %s1943_s28   ;;  %s1614_s30 = sadd.s32 4294967294, %s1943_s28   ;;  %s1943_s28 = sphi %s2038_s28, %s2372_s28   ;;  %s1939_s27 = sphi %s2036_s27, %s2371_s27   ;;  %s1935_s26 = sphi %s2034_s26, %s2370_s26   ;;  %s1931_s25 = sphi %s2032_s25, %s2369_s25  }
   0x9   : > { %s2057_s14 = sadd.s32 1, %s1943_s28   ;;  %s311_s15 = sadd.s32 1, %s1939_s27 }
   0xa   : > { %s308_s16 = ssub.s32 %s1943_s28, %s2057_s14  ;;  %p321_p0 = scmp.ne.s32.totalorder %s1939_s27, %s1935_s26 }
   0xb   : > { %p309_p1 = scmp.eq.s32.totalorder %s308_s16, 0  ;;  %p322_p2 = scmp.eq.s32.totalorder %s2053_s29, 1 }
   0xc   : > { %p327_p3 = scmp.ne.s32.totalorder %s1935_s26, %s1931_s25  ;;  %p328_p4 = scmp.eq.s32.totalorder %s1614_s30, 1 }
   0xd   : > { %s2068_s17 = scalar_select %p309_p1, %s1939_s27, %s311_s15  }
   0xe   : > { %p2070_p5 = por %p322_p2, %p321_p0  ;;  %p2074_p6 = por %p328_p4, %p327_p3 }
   0xf   : > { %p1617_p7 = scmp.ge.s32.totalorder %s1943_s28, 1  ;;  %p389_p8 = scmp.lt.s32.totalorder %s1943_s28, 3 }
  0x11   : > { %p390_p9 = pnand %p1617_p7, %p389_p8 }
  0x12   : > { %p432_p10 = scmp.lt.s32.totalorder (!%p390_p9), %s2053_s29, 1  ;;  %s2365_s0 = sld [smem:[#allocation6_spill]] (!%p390_p9) }
  0x13   : > { %393 = sbr.rel (%p390_p9) target bundleno = 2436 (0x984), region = 72  ;;  %s2366_s3 = sld [smem:[#allocation9_spill]] (!%p390_p9) }
  0x14   : > { %s2367_s1 = sld [smem:[#allocation7_spill]] (!%p390_p9)  ;;  %s1947_s23 = smov (!%p390_p9), 120  }
  0x15   : > { %s2368_s2 = sld [smem:[#allocation8_spill]] (!%p390_p9)  ;;  %s1949_s30 = smov (!%p390_p9), 88  }
  0x16   : > { %s1950_s15 = smov (!%p390_p9), 80   ;;  %s1951_s16 = smov (!%p390_p9), 112  }
  0x17   : > { %s1954_s22 = smov (!%p390_p9), 64  }
  0x18   : > { %s433_s20 = scalar_select %p432_p10, %s2053_s29, 1  ;;  %vm439_vm0 = vcmask 261120   ;;  %v1945_v8 = vmov 0.0   ;;  %vm1946_vm1 = vmmov 0   ;;  %v1622_v21 = vld [vmem:[%s2349_s4] ss:$0 sm:$0xff]  ;;  %v468_v32 = vlaneseq }
  0x19   : > { %v476_v7 = vld [vmem:[%s2366_s3 + $0x18] sm:$0xff]  ;;  %1696 = vmatprep.subr.mxu1 %v1945_v8  ;;  %v475_v9 = vld [vmem:[%s2366_s3 + $0x10] sm:$0xff]  ;;  %1704 = vmatprep.mubr.msk.f32.mxu1 %vm1946_vm1, %v1945_v8  ;;  %v474_v10 = vld [vmem:[%s2366_s3 + $0x8] sm:$0xff]  ;;  %vm560_vm2 = vcmask 64512   ;;  %vm1234_vm4 = vcmask 130048   ;;  %vm1236_vm5 = vcmask 195584  }
  0x1a   : > { %s1619_s21 = sshll.u32 %s433_s20, 3  ;;  %1697 = vmatpush3.msra.mxu1 %v476_v7  ;;  %1717 = vmatprep.subr.mxu0 %v1945_v8  ;;  %v473_v11 = vld [vmem:[%s2366_s3] sm:$0xff]  ;;  %s1952_s20 = smov 72   ;;  %v469_v33 = vshrl.u32 %v468_v32, 7  ;;  %v471_v34 = vand.u32 127, %v468_v32 }
  0x1b   : > { %s435_s24 = scalar_lea.vmem %s2365_s0, %s1619_s21  ;;  %1698 = vmatprep.subr.mxu1 %v1945_v8  ;;  %1719 = vmatprep.mubr.msk.f32.mxu0 %vm1946_vm1, %v1945_v8  ;;  %v1620_v16 = vld [vmem:[%s2367_s1] ss:$0 sm:$0xff]  ;;  %s1953_s21 = smov 104  }
  0x1c   : > { %v2085_v0 = vld [vmem:[%s435_s24] sm:$0xff]  ;;  %1699 = vmatpush3.msra.mxu1 %v475_v9  ;;  %s1948_s24 = smov 96   ;;  %vm472_vm3 = vcmp.gt.s32.totalorder %v471_v34, %v469_v33 }
  0x1d   : > { %v440_v1 = vsel %vm439_vm0, %v2085_v0, 0.0  ;;  %1700 = vmatprep.subr.mxu1 %v1945_v8  ;;  %v1621_v18 = vld [vmem:[%s2368_s2] ss:$0 sm:$0xff] }
  0x1e   : > { %441 = vadd.xlane.f32.xlu0 %v440_v1  ;;  %1701 = vmatpush3.msra.mxu1 %v474_v10  ;;  %v1240_v33 = vld [vmem:[%s2350_s5] sm:$0xff] }
  0x1f   : > { %1702 = vmatprep.subr.mxu1 %v1945_v8 }
  0x20   : > { %1703 = vmatpush3.msra.mxu1 %v473_v11 }
  0x21   : > { %1707 = vmatprep.subr.mxu1 %v1945_v8 }
  0xa7   : > { %v442_v2 = vpop.xlane.xlu0 %441 }
  0xa8   : > { %v444_v3 = vmul.f32 0.03125, %v442_v2 }
  0xaa   : > { %v445_v4 = vsub.f32 %v2085_v0, %v444_v3 }
  0xac   : > { %v446_v5 = vmul.f32 %v445_v4, %v445_v4 }
  0xae   : > { %v447_v6 = vsel %vm439_vm0, %v446_v5, 0.0 }
  0xaf   : > { %448 = vadd.xlane.f32.xlu0 %v447_v6 }
 0x138   : > { %v449_v12 = vpop.xlane.xlu0 %448 }
 0x139   : > { %v450_v13 = vmul.f32 0.03125, %v449_v12 }
 0x13b   : > { %v451_v14 = vadd.f32 1e-05, %v450_v13 }
 0x13d   : > { %1859 = vrsqrt.f32 %v451_v14 }
 0x14a   : > { %v1860_v15 = vpop.eup %1859 }
 0x14b   : > { %v453_v17 = vmul.f32 %v1860_v15, %v445_v4 }
 0x14d   : > { %v460_v19 = vmul.f32 %v1620_v16, %v453_v17 }
 0x14f   : > { %v467_v20 = vadd.f32 %v1621_v18, %v460_v19 }
 0x151   : > { %1705 = vmatmul.mubr.msk.f32.vlgmr.msra.gmra.mxu1 %vm439_vm0, %v467_v20 }
 0x152   : > { %1709 = vmatprep.mubr.msk.f32.mxu1 %vm1946_vm1, %v1945_v8 }
 0x211   : > { %v553_v22 = vpop.f32.mrf.mxu1 }
 0x212   : > { %v2125_v23 = vadd.f32 %v1622_v21, %v553_v22 }
 0x213   : > { %v1706_v24 = vpop.f32.mrf.mxu1 }
 0x214   : > { %723 = vrot.lane.b32.xlu0 %v2125_v23, %s1947_s23  ;;  %558 = vrot.lane.b32.xlu1 %v2125_v23, %s1948_s24  ;;  %s1955_s23 = smov 48   ;;  %s1956_s24 = smov 40  }
 0x218   : > { %725 = vrot.lane.b32.xlu1 %v2125_v23, %s1949_s30  ;;  %s1957_s30 = smov 56  }
 0x21c   : > { %891 = vrot.lane.b32.xlu1 %v2125_v23, %s1950_s15 }
 0x220   : > { %889 = vrot.lane.b32.xlu1 %v2125_v23, %s1951_s16  ;;  %s1959_s16 = smov 16  }
 0x224   : > { %1057 = vrot.lane.b32.xlu1 %v2125_v23, %s1952_s20  ;;  %s1960_s20 = smov 24  }
 0x228   : > { %1055 = vrot.lane.b32.xlu1 %v2125_v23, %s1953_s21  ;;  %s429_s21 = sand.u32 1, %s1935_s26  }
 0x229   : > { %s1542_s2 = scalar_lea.sflag [#allocation4], %s429_s21 }
 0x286   : > { %v559_v25 = vpop.permute.xlu1 %558  ;;  %v724_v27 = vpop.permute.xlu0 %723 }
 0x287   : > { %1708 = vmatpush3.xpose.msk.msra.mxu1 %vm560_vm2, %v559_v25 }
 0x288   : > { %1712 = vmatprep.subr.mxu1 %v1945_v8 }
 0x28a   : > { %1710 = vmatmul.mubr.msk.f32.vlgmr.msra.gmra.mxu1 %vm560_vm2, %v2125_v23  ;;  %v726_v26 = vpop.permute.xlu1 %725 }
 0x28b   : > { %1718 = vmatpush3.xpose.msk.msra.mxu0 %vm560_vm2, %v726_v26  ;;  %1714 = vmatprep.mubr.msk.f32.mxu1 %vm1946_vm1, %v1945_v8 }
 0x28c   : > { %1727 = vmatprep.subr.mxu0 %v1945_v8 }
 0x28e   : > { %1720 = vmatmul.mubr.msk.f32.vlgmr.msra.gmra.mxu0 %vm560_vm2, %v724_v27  ;;  %v892_v28 = vpop.permute.xlu1 %891 }
 0x28f   : > { %1728 = vmatpush3.xpose.msk.msra.mxu0 %vm560_vm2, %v892_v28  ;;  %1729 = vmatprep.mubr.msk.f32.mxu0 %vm1946_vm1, %v1945_v8  ;;  %v1243_v28 = vld [vmem:[%s2350_s5 + $0x18] sm:$0xff] }
 0x290   : > { %1737 = vmatprep.subr.mxu0 %v1945_v8 }
 0x292   : > { %v890_v29 = vpop.permute.xlu1 %889 }
 0x293   : > { %1730 = vmatmul.mubr.msk.f32.vlgmr.msra.gmra.mxu0 %vm560_vm2, %v890_v29  ;;  %v1242_v29 = vld [vmem:[%s2350_s5 + $0x10] sm:$0xff] }
 0x294   : > { %1739 = vmatprep.mubr.msk.f32.mxu0 %vm1946_vm1, %v1945_v8 }
 0x296   : > { %v1058_v30 = vpop.permute.xlu1 %1057 }
 0x297   : > { %1738 = vmatpush3.xpose.msk.msra.mxu0 %vm560_vm2, %v1058_v30 }
 0x298   : > { %1769 = vmatprep.subr.mxu0 %v1945_v8 }
 0x29a   : > { %v1056_v31 = vpop.permute.xlu1 %1055 }
 0x29b   : > { %1740 = vmatmul.mubr.msk.f32.vlgmr.msra.gmra.mxu0 %vm560_vm2, %v1056_v31  ;;  %v1241_v31 = vld [vmem:[%s2350_s5 + $0x8] sm:$0xff] }
 0x29c   : > { %1801 = vmatprep.mubr.msk.f32.mxu0 %vm1946_vm1, %v1945_v8 }
 0x34a   : > { %v631_v35 = vpop.f32.mrf.mxu1 }
 0x34b   : > { %v635_v36 = vsel %vm472_vm3, -1e+30, %v631_v35 }
 0x34c   : > { %v1711_v37 = vpop.f32.mrf.mxu1  ;;  %v636_v38 = vsel %vm560_vm2, %v635_v36, -inf }
 0x34d   : > { %637 = vmax.xlane.f32.xlu1 %v636_v38 }
 0x34e   : > { %v797_v39 = vpop.f32.mrf.mxu0 }
 0x34f   : > { %v801_v40 = vsel %vm472_vm3, -1e+30, %v797_v39 }
 0x350   : > { %v1721_v41 = vpop.f32.mrf.mxu0  ;;  %v802_v42 = vsel %vm560_vm2, %v801_v40, -inf }
 0x351   : > { %803 = vmax.xlane.f32.xlu0 %v802_v42 }
 0x353   : > { %v963_v43 = vpop.f32.mrf.mxu0 }
 0x354   : > { %v967_v44 = vsel %vm472_vm3, -1e+30, %v963_v43 }
 0x355   : > { %v1731_v45 = vpop.f32.mrf.mxu0  ;;  %v968_v46 = vsel %vm560_vm2, %v967_v44, -inf }
 0x356   : > { %969 = vmax.xlane.f32.xlu1 %v968_v46 }
 0x35b   : > { %v1129_v47 = vpop.f32.mrf.mxu0 }
 0x35c   : > { %v1133_v48 = vsel %vm472_vm3, -1e+30, %v1129_v47 }
 0x35d   : > { %v1741_v49 = vpop.f32.mrf.mxu0  ;;  %v1134_v50 = vsel %vm560_vm2, %v1133_v48, -inf }
 0x35e   : > { %1135 = vmax.xlane.f32.xlu0 %v1134_v50 }
 0x367   : > { %647 = vrot.lane.b32.xlu1 %v2125_v23, %s1954_s22  ;;  %s1958_s22 = smov 8  }
 0x3d6   : > { %v638_v51 = vpop.xlane.xlu1 %637 }
 0x3d7   : > { %v639_v52 = vsub.f32 %v635_v36, %v638_v51 }
 0x3d9   : > { %v640_v53 = vmul.f32 1.442695, %v639_v52 }
 0x3da   : > { %v804_v54 = vpop.xlane.xlu0 %803 }
 0x3db   : > { %1861 = vpow2.f32 %v640_v53  ;;  %v805_v55 = vsub.f32 %v801_v40, %v804_v54 }
 0x3dd   : > { %v806_v56 = vmul.f32 1.442695, %v805_v55  ;;  %v1357_v55 = vld [vmem:[%s2354_s9 + $0x18] sm:$0xff] }
 0x3df   : > { %1863 = vpow2.f32 %v806_v56  ;;  %v970_v57 = vpop.xlane.xlu1 %969  ;;  %v1355_v56 = vld [vmem:[%s2354_s9 + $0x8] sm:$0xff] }
 0x3e0   : > { %v971_v58 = vsub.f32 %v967_v44, %v970_v57  ;;  %v1636_v44 = vld [vmem:[%s2351_s6] ss:$0 sm:$0xff] }
 0x3e1   : > { %v1354_v57 = vld [vmem:[%s2354_s9] sm:$0xff] }
 0x3e2   : > { %v972_v59 = vmul.f32 1.442695, %v971_v58 }
 0x3e3   : > { %v648_v60 = vpop.permute.xlu1 %647 }
 0x3e4   : > { %1865 = vpow2.f32 %v972_v59  ;;  %1713 = vmatpush3.msra.mxu1 %v648_v60 }
 0x3e5   : > { %1722 = vmatprep.subr.mxu1 %v1945_v8 }
 0x3e7   : > { %v1136_v61 = vpop.xlane.xlu0 %1135 }
 0x3e8   : > { %v1862_v62 = vpop.eup %1861  ;;  %v1137_v63 = vsub.f32 %v1133_v48, %v1136_v61 }
 0x3e9   : > { %v642_v1 = vsel %vm560_vm2, %v1862_v62, 0.0 }
 0x3ea   : > { %v1138_v2 = vmul.f32 1.442695, %v1137_v63  ;;  %643 = vadd.xlane.f32.xlu1 %v642_v1  ;;  %v1639_v1 = vld [vmem:[%s2353_s8] ss:$0 sm:$0xff] }
 0x3ec   : > { %v1864_v3 = vpop.eup %1863  ;;  %1867 = vpow2.f32 %v1138_v2 }
 0x3ed   : > { %v808_v4 = vsel %vm560_vm2, %v1864_v3, 0.0 }
 0x3ee   : > { %809 = vadd.xlane.f32.xlu0 %v808_v4  ;;  %v1461_v4 = vld [vmem:[%s2356_s11 + $0x78] sm:$0xff] }
 0x3ef   : > { %1770 = vmatpush3.msra.mxu0 %v1461_v4 }
 0x3f0   : > { %1771 = vmatprep.subr.mxu0 %v1945_v8 }
 0x3f1   : > { %v1866_v5 = vpop.eup %1865 }
 0x3f2   : > { %v974_v6 = vsel %vm560_vm2, %v1866_v5, 0.0 }
 0x3f3   : > { %975 = vadd.xlane.f32.xlu1 %v974_v6  ;;  %v1459_v6 = vld [vmem:[%s2356_s11 + $0x68] sm:$0xff] }
 0x3f9   : > { %v1868_v7 = vpop.eup %1867 }
 0x3fa   : > { %v1140_v9 = vsel %vm560_vm2, %v1868_v7, 0.0 }
 0x3fb   : > { %1141 = vadd.xlane.f32.xlu0 %v1140_v9  ;;  %v1457_v9 = vld [vmem:[%s2356_s11 + $0x58] sm:$0xff] }
 0x404   : > { %979 = vrot.lane.b32.xlu1 %v2125_v23, %s1955_s23 }
 0x408   : > { %1145 = vrot.lane.b32.xlu1 %v2125_v23, %s1956_s24 }
 0x411   : > { %813 = vrot.lane.b32.xlu0 %v2125_v23, %s1957_s30  ;;  %s1645_s30 = sshll.u32 %s2053_s29, 7  ;;  %s1961_s29 = smov [#allocation3]  }
 0x412   : > { %s1553_s1 = scalar_lea.hbm %s2358_s13, %s1645_s30 }
 0x473   : > { %v644_v10 = vpop.xlane.xlu1 %643 }
 0x474   : > { %1869 = vrcp.f32 %v644_v10  ;;  %v1456_v10 = vld [vmem:[%s2356_s11 + $0x50] sm:$0xff] }
 0x477   : > { %v810_v11 = vpop.xlane.xlu0 %809 }
 0x478   : > { %1871 = vrcp.f32 %v810_v11  ;;  %v1455_v11 = vld [vmem:[%s2356_s11 + $0x48] sm:$0xff] }
 0x47c   : > { %v976_v12 = vpop.xlane.xlu1 %975 }
 0x47d   : > { %1873 = vrcp.f32 %v976_v12  ;;  %v1454_v12 = vld [vmem:[%s2356_s11 + $0x40] sm:$0xff] }
 0x480   : > { %v980_v17 = vpop.permute.xlu1 %979 }
 0x481   : > { %v1870_v13 = vpop.eup %1869 }
 0x482   : > { %v646_v14 = vmul.f32 %v1870_v13, %v1862_v62  ;;  %v1638_v62 = vld [vmem:[%s2352_s7] ss:$0 sm:$0xff]  ;;  %v1453_v13 = vld [vmem:[%s2356_s11 + $0x38] sm:$0xff] }
 0x484   : > { %v1142_v15 = vpop.xlane.xlu0 %1141  ;;  %1715 = vmatmul.mubr.msk.f32.vlgmr.msra.gmra.mxu1 %vm560_vm2, %v646_v14  ;;  %v1146_v22 = vpop.permute.xlu1 %1145  ;;  %v1452_v14 = vld [vmem:[%s2356_s11 + $0x30] sm:$0xff] }
 0x485   : > { %v1872_v16 = vpop.eup %1871  ;;  %1875 = vrcp.f32 %v1142_v15  ;;  %1724 = vmatprep.mubr.msk.f32.mxu1 %vm1946_vm1, %v1945_v8  ;;  %v1451_v15 = vld [vmem:[%s2356_s11 + $0x28] sm:$0xff] }
 0x486   : > { %v812_v19 = vmul.f32 %v1872_v16, %v1864_v3  ;;  %v1450_v16 = vld [vmem:[%s2356_s11 + $0x20] sm:$0xff] }
 0x488   : > { %v814_v18 = vpop.permute.xlu0 %813 }
 0x489   : > { %1723 = vmatpush3.msra.mxu1 %v814_v18  ;;  %v1448_v18 = vld [vmem:[%s2356_s11 + $0x10] sm:$0xff] }
 0x48a   : > { %v1874_v20 = vpop.eup %1873  ;;  %1725 = vmatmul.mubr.msk.f32.vlgmr.msra.gmra.mxu1 %vm560_vm2, %v812_v19  ;;  %1732 = vmatprep.subr.mxu1 %v1945_v8  ;;  %v1447_v19 = vld [vmem:[%s2356_s11 + $0x8] sm:$0xff] }
 0x48b   : > { %1733 = vmatpush3.msra.mxu1 %v980_v17  ;;  %1734 = vmatprep.mubr.msk.f32.mxu1 %vm1946_vm1, %v1945_v8  ;;  %v978_v21 = vmul.f32 %v1874_v20, %v1866_v5  ;;  %v1460_v5 = vld [vmem:[%s2356_s11 + $0x70] sm:$0xff]  ;;  %v1449_v17 = vld [vmem:[%s2356_s11 + $0x18] sm:$0xff]  ;;  %v1446_v20 = vld [vmem:[%s2356_s11] sm:$0xff] }
 0x48c   : > { %1742 = vmatprep.subr.mxu1 %v1945_v8  ;;  %1772 = vmatpush3.msra.mxu0 %v1460_v5 }
 0x48d   : > { %1773 = vmatprep.subr.mxu0 %v1945_v8 }
 0x48e   : > { %1735 = vmatmul.mubr.msk.f32.vlgmr.msra.gmra.mxu1 %vm560_vm2, %v978_v21  ;;  %1774 = vmatpush3.msra.mxu0 %v1459_v6  ;;  %v1640_v21 = vld [vmem:[%s2355_s10] ss:$0 sm:$0xff] }
 0x48f   : > { %1743 = vmatpush3.msra.mxu1 %v1146_v22  ;;  %1744 = vmatprep.mubr.msk.f32.mxu1 %vm1946_vm1, %v1945_v8 }
 0x490   : > { %1747 = vmatprep.subr.mxu1 %v1945_v8  ;;  %1775 = vmatprep.subr.mxu0 %v1945_v8 }
 0x492   : > { %v1876_v23 = vpop.eup %1875 }
 0x493   : > { %v1144_v24 = vmul.f32 %v1876_v23, %v1868_v7  ;;  %v1458_v7 = vld [vmem:[%s2356_s11 + $0x60] sm:$0xff] }
 0x494   : > { %1776 = vmatpush3.msra.mxu0 %v1458_v7 }
 0x495   : > { %1745 = vmatmul.mubr.msk.f32.vlgmr.msra.gmra.mxu1 %vm560_vm2, %v1144_v24  ;;  %1777 = vmatprep.subr.mxu0 %v1945_v8 }
 0x496   : > { %1755 = vmatprep.mubr.msk.f32.mxu1 %vm1946_vm1, %v1945_v8  ;;  %1748 = vmatpush3.msra.mxu1 %v1243_v28 }
 0x497   : > { %1749 = vmatprep.subr.mxu1 %v1945_v8  ;;  %1778 = vmatpush3.msra.mxu0 %v1457_v9 }
 0x498   : > { %1750 = vmatpush3.msra.mxu1 %v1242_v29  ;;  %1779 = vmatprep.subr.mxu0 %v1945_v8 }
 0x499   : > { %1751 = vmatprep.subr.mxu1 %v1945_v8  ;;  %1780 = vmatpush3.msra.mxu0 %v1456_v10 }
 0x49a   : > { %1752 = vmatpush3.msra.mxu1 %v1241_v31  ;;  %1781 = vmatprep.subr.mxu0 %v1945_v8 }
 0x49b   : > { %1753 = vmatprep.subr.mxu1 %v1945_v8  ;;  %1782 = vmatpush3.msra.mxu0 %v1455_v11 }
 0x49c   : > { %1754 = vmatpush3.msra.mxu1 %v1240_v33  ;;  %1783 = vmatprep.subr.mxu0 %v1945_v8 }
 0x49d   : > { %1758 = vmatprep.subr.mxu1 %v1945_v8  ;;  %1784 = vmatpush3.msra.mxu0 %v1454_v12 }
 0x49e   : > { %1785 = vmatprep.subr.mxu0 %v1945_v8 }
 0x49f   : > { %1786 = vmatpush3.msra.mxu0 %v1453_v13 }
 0x4a0   : > { %1787 = vmatprep.subr.mxu0 %v1945_v8 }
 0x4a1   : > { %1788 = vmatpush3.msra.mxu0 %v1452_v14 }
 0x4a2   : > { %1789 = vmatprep.subr.mxu0 %v1945_v8 }
 0x4a3   : > { %1790 = vmatpush3.msra.mxu0 %v1451_v15 }
 0x4a4   : > { %1791 = vmatprep.subr.mxu0 %v1945_v8 }
 0x4a5   : > { %1792 = vmatpush3.msra.mxu0 %v1450_v16 }
 0x4a6   : > { %1793 = vmatprep.subr.mxu0 %v1945_v8 }
 0x4a7   : > { %1794 = vmatpush3.msra.mxu0 %v1449_v17 }
 0x4a8   : > { %1795 = vmatprep.subr.mxu0 %v1945_v8 }
 0x4a9   : > { %1796 = vmatpush3.msra.mxu0 %v1448_v18 }
 0x4aa   : > { %1797 = vmatprep.subr.mxu0 %v1945_v8 }
 0x4ab   : > { %1798 = vmatpush3.msra.mxu0 %v1447_v19 }
 0x4ac   : > { %1799 = vmatprep.subr.mxu0 %v1945_v8 }
 0x4ad   : > { %1800 = vmatpush3.msra.mxu0 %v1446_v20 }
 0x544   : > { %v719_v25 = vpop.f32.mrf.mxu1 }
 0x546   : > { %v1716_v26 = vpop.f32.mrf.mxu1 }
 0x54a   : > { %v885_v27 = vpop.f32.mrf.mxu1 }
 0x54b   : > { %1222 = vrot.lane.b32.xlu0 %v885_v27, %s1958_s22  ;;  %s1618_s22 = sshll.u32 %s429_s21, 3 }
 0x54c   : > { %v1726_v30 = vpop.f32.mrf.mxu1  ;;  %s431_s15 = scalar_lea.vmem [#allocation3], %s1618_s22  ;;  %s1887_s22 = sshll.u32 %s1961_s29, 4  ;;  %s1888_s22 = int_to_ptr.vmem [resolvable:$false] %s1887_s22 }
 0x54d   : > { %s1889_s23 = scalar_lea.vmem %s1888_s22, 256 }
 0x54e   : > { %v1051_v32 = vpop.f32.mrf.mxu1 }
 0x54f   : > { %1226 = vrot.lane.b32.xlu1 %v1051_v32, %s1959_s16  ;;  %s1555_s16 = sshll.u32 %s431_s15, 4  ;;  %s1556_s16 = int_to_ptr.vmem [resolvable:$true] %s1555_s16 }
 0x550   : > { %v1736_v34 = vpop.f32.mrf.mxu1  ;;  %s1883_s3 = scalar_lea.vmem %s1556_s16, 128  ;;  %p1890_p0 = scmp.lt.s32.totalorder %s1556_s16, %s1888_s22 }
 0x551   : > { %p1884_p11 = scmp.ne.s32.totalorder %s1556_s16, %s1883_s3  ;;  %p1891_p1 = scmp.lt.s32.totalorder %s1889_s23, %s1883_s3 }
 0x553   : > { %p1885_p12 = pnand %p1884_p11, %p2070_p5  ;;  %p1892_p2 = por %p1891_p1, %p1890_p0 }
 0x555   : > { %v1217_v35 = vpop.f32.mrf.mxu1  ;;  %p1886_p13 = pneg %p1885_p12 }
 0x556   : > { %1230 = vrot.lane.b32.xlu0 %v1217_v35, %s1960_s20 }
 0x557   : > { %v1746_v36 = vpop.f32.mrf.mxu1  ;;  %p1893_p3 = pnand %p1892_p2, %p1886_p13 }
 0x5bd   : > { %v1223_v37 = vpop.permute.xlu0 %1222 }
 0x5be   : > { %v1233_v39 = vsel %vm560_vm2, %v719_v25, %v1223_v37 }
 0x5c1   : > { %v1227_v38 = vpop.permute.xlu1 %1226 }
 0x5c2   : > { %v1235_v40 = vsel %vm1234_vm4, %v1233_v39, %v1227_v38 }
 0x5c8   : > { %v1231_v41 = vpop.permute.xlu0 %1230 }
 0x5c9   : > { %v1237_v42 = vsel %vm1236_vm5, %v1235_v40, %v1231_v41 }
 0x5ca   : > { %1238 = vst.msk [vmem:[#allocation2] sm:$0xff] %vm439_vm0, %v1237_v42 }
 0x5d1   : > { %v1239_v43 = vld [vmem:[#allocation2] sm:$0xff] }
 0x5d2   : > { %1756 = vmatmul.mubr.msk.f32.vlgmr.msra.gmra.mxu1 %vm439_vm0, %v1239_v43 }
 0x5d3   : > { %1766 = vmatprep.mubr.msk.f32.mxu1 %vm1946_vm1, %v1945_v8  ;;  %1759 = vmatpush3.msra.mxu1 %v1357_v55 }
 0x5d4   : > { %1760 = vmatprep.subr.mxu1 %v1945_v8 }
 0x692   : > { %v1320_v45 = vpop.f32.mrf.mxu1 }
 0x693   : > { %v1321_v46 = vadd.f32 %v1636_v44, %v1320_v45 }
 0x694   : > { %v1757_v47 = vpop.f32.mrf.mxu1 }
 0x695   : > { %v2212_v48 = vadd.f32 %v1321_v46, %v2085_v0  ;;  %v1356_v0 = vld [vmem:[%s2354_s9 + $0x10] sm:$0xff] }
 0x696   : > { %1761 = vmatpush3.msra.mxu1 %v1356_v0 }
 0x697   : > { %v1327_v49 = vsel %vm439_vm0, %v2212_v48, 0.0  ;;  %1762 = vmatprep.subr.mxu1 %v1945_v8 }
 0x698   : > { %1328 = vadd.xlane.f32.xlu1 %v1327_v49  ;;  %1763 = vmatpush3.msra.mxu1 %v1355_v56 }
 0x699   : > { %1764 = vmatprep.subr.mxu1 %v1945_v8  ;;  %v1643_v8 = vld [vmem:[%s2357_s12] ss:$0 sm:$0xff] }
 0x69a   : > { %1765 = vmatpush3.msra.mxu1 %v1354_v57 }
 0x721   : > { %v1329_v50 = vpop.xlane.xlu1 %1328 }
 0x722   : > { %v1330_v51 = vmul.f32 0.03125, %v1329_v50 }
 0x724   : > { %v1331_v52 = vsub.f32 %v2212_v48, %v1330_v51 }
 0x726   : > { %v1332_v53 = vmul.f32 %v1331_v52, %v1331_v52 }
 0x728   : > { %v1333_v54 = vsel %vm439_vm0, %v1332_v53, 0.0 }
 0x729   : > { %1334 = vadd.xlane.f32.xlu0 %v1333_v54 }
 0x7b2   : > { %v1335_v58 = vpop.xlane.xlu0 %1334 }
 0x7b3   : > { %v1336_v59 = vmul.f32 0.03125, %v1335_v58 }
 0x7b5   : > { %v1337_v60 = vadd.f32 1e-05, %v1336_v59 }
 0x7b7   : > { %1877 = vrsqrt.f32 %v1337_v60 }
 0x7c4   : > { %v1878_v61 = vpop.eup %1877 }
 0x7c5   : > { %v1339_v63 = vmul.f32 %v1878_v61, %v1331_v52 }
 0x7c7   : > { %v1346_v2 = vmul.f32 %v1638_v62, %v1339_v63 }
 0x7c9   : > { %v1353_v3 = vadd.f32 %v1639_v1, %v1346_v2 }
 0x7cb   : > { %1767 = vmatmul.mubr.msk.f32.vlgmr.msra.gmra.mxu1 %vm439_vm0, %v1353_v3 }
 0x88b   : > { %v1434_v22 = vpop.f32.mrf.mxu1 }
 0x88c   : > { %v1435_v23 = vadd.f32 %v1640_v21, %v1434_v22 }
 0x88d   : > { %v1768_v24 = vpop.f32.mrf.mxu1 }
 0x88e   : > { %v1642_v25 = vmul.f32 -1.702, %v1435_v23 }
 0x890   : > { %v1440_v26 = vmul.f32 1.442695, %v1642_v25 }
 0x892   : > { %1879 = vpow2.f32 %v1440_v26 }
 0x89f   : > { %v1880_v27 = vpop.eup %1879 }
 0x8a0   : > { %v1442_v28 = vadd.f32 1.0, %v1880_v27 }
 0x8a2   : > { %1881 = vrcp.f32 %v1442_v28 }
 0x8af   : > { %v1882_v29 = vpop.eup %1881 }
 0x8b0   : > { %v1445_v30 = vmul.f32 %v1882_v29, %v1435_v23 }
 0x8b2   : > { %1802 = vmatmul.mubr.f32.vlgmr.msra.gmra.mxu0 %v1445_v30 }
 0x972   : > { %v1535_v31 = vpop.f32.mrf.mxu0 }
 0x973   : > { %v1536_v32 = vadd.f32 %v1643_v8, %v1535_v31 }
 0x974   : > { %v1803_v33 = vpop.f32.mrf.mxu0 }
 0x975   : > { %v1539_v34 = vadd.f32 %v1536_v32, %v2212_v48 }
 0x977   : > { %1540 = vst.msk [vmem:[%s431_s15] sm:$0xff] %vm439_vm0, %v1539_v34 }
 0x978   : > { %1896 = shalt.err (!%p1893_p3)
}
 0x979   : > { %s1897_s0 = scalar_lea.hbm %s1553_s1, 128  ;;  %s1901_s30 = scalar_lea.hbm %s2358_s13, 256 }
 0x97a   : > { %p1898_p4 = scmp.ne.s32.totalorder %s1553_s1, %s1897_s0  ;;  %p1902_p9 = scmp.lt.s32.totalorder %s1553_s1, %s2358_s13 }
 0x97b   : > { %p1903_p10 = scmp.lt.s32.totalorder %s1901_s30, %s1897_s0 }
 0x97c   : > { %p1899_p7 = pnand %p1898_p4, %p2070_p5 }
 0x97d   : > { %p1904_p11 = por %p1903_p10, %p1902_p9 }
 0x97e   : > { %p1900_p8 = pneg %p1899_p7 }
 0x980   : > { %p1905_p12 = pnand %p1904_p11, %p1900_p8 }
 0x982   : > { %1908 = shalt.err (!%p1905_p12)
}
 0x983   : > { %1804 = dma.vmem_to_hbm [thread:$0]  (%p2070_p5), %s1556_s16, 128, %s1553_s1, %s1542_s2  }
 0x984 PF: > { %p1810_p13 = scmp.ge.s32.totalorder %s1943_s28, 2  ;;  %s1567_s3 = sand.u32 1, %s1931_s25  }
 0x985   : > { %s1568_s29 = scalar_lea.sflag [#allocation4], %s1567_s3 }
 0x986   : > { %p1807_p0 = pnand %p1810_p13, %p2074_p6 }
 0x988   : > { %p1808_p1 = pneg %p1807_p0 }
 0x98a   : > { %1926 = dma.done.wait (%p1808_p1), %s1568_s29, 128  }
 0x98b   : > { %1928 = vsyncadd (%p1808_p1), %s1568_s29, 4294967168  ;;  %p23_p2 = scmp.ge.s32.totalorder %s2057_s14, 4   ;;  %s2369_s25 = smov %s1935_s26 }
 0x98c   : > { %s2370_s26 = smov %s1939_s27  ;;  %s2371_s27 = smov %s2068_s17 }
 0x98d   : > { %s2372_s28 = smov %s2057_s14  ;;  %25 = sbr.rel (!%p23_p2) target bundleno = 8 (0x8), region = 107 }
 0x992   :  { %1573 = vsyncpa [#allocation4], 1 }
 0x993   :  { %1575 = vsyncpa [#allocation4 + $0x1], 1 }

</bundles_post_ra>
